<compile_context>
chip_gen: v7x
topology: tpu7x:2x2x1
jax: 0.10.0
libtpu: 0.0.40
codegen_flags: <defaults>
</compile_context>

<pallas_src>
import functools

import jax
import jax.numpy as jnp
from jax import lax
from jax.experimental import pallas as pl
from jax.experimental.pallas import tpu as pltpu


def _round_up(x, m):
    return (x + m - 1) // m * m


def _vmem_capacity_bytes():
    try:
        return int(pltpu.get_tpu_info().vmem_capacity_bytes)
    except Exception:
        return 64 << 20   # conservative fallback (v7x per-core VMEM)


def _flash_body(dec_ref, enc_ref, ctx_ref, score_ref, m_sc, l_sc, acc_sc,
                *, tk_valid, tk_tile, tk_pad):
    """One (b, q, kt) grid step of online-softmax dot attention."""
    kt = pl.program_id(2)

    @pl.when(kt == 0)
    def _init():
        m_sc[...] = jnp.full_like(m_sc, -jnp.inf)
        l_sc[...] = jnp.zeros_like(l_sc)
        acc_sc[...] = jnp.zeros_like(acc_sc)

    q = dec_ref[0]                      # (TQ, H_pad)   compute dtype (bf16 by default)
    e = enc_ref[0]                      # (TK, H_pad)

    # attn_score tile = q @ e^T, contraction over the last dims (no XLU transpose),
    # f32 accumulation on the MXU.
    s = lax.dot_general(
        q, e, dimension_numbers=(((1,), (1,)), ((), ())),
        preferred_element_type=jnp.float32)                       # (TQ, TK) f32

    if score_ref is not None:
        score_ref[0] = s.astype(score_ref.dtype)                  # raw (pre-softmax) score

    # Mask padded key columns so they get zero softmax weight.
    if tk_pad > tk_valid:
        col = kt * tk_tile + lax.broadcasted_iota(jnp.int32, s.shape, 1)
        s = jnp.where(col < tk_valid, s, -1e30)

    # Online (flash) softmax update, all f32 elementwise (v5e has no bf16 VPU/EUP).
    m_prev = m_sc[...]                                            # (TQ, 1)
    m_new = jnp.maximum(m_prev, jnp.max(s, axis=-1, keepdims=True))
    alpha = jnp.exp(m_prev - m_new)
    p = jnp.exp(s - m_new)                                        # (TQ, TK) f32

    l_sc[...] = alpha * l_sc[...] + jnp.sum(p, axis=-1, keepdims=True)
    # Deferred normalization: accumulate un-normalized context; scale once at the end.
    acc_sc[...] = alpha * acc_sc[...] + lax.dot_general(
        p.astype(e.dtype), e, dimension_numbers=(((1,), (0,)), ((), ())),
        preferred_element_type=jnp.float32)                       # (TQ, H_pad) f32
    m_sc[...] = m_new

    @pl.when(kt == pl.num_programs(2) - 1)
    def _finalize():
        ctx_ref[0] = (acc_sc[...] *
                      pl.reciprocal(l_sc[...], approx=True)).astype(ctx_ref.dtype)


def _kernel_with_score(dec_ref, enc_ref, ctx_ref, score_ref, m_sc, l_sc, acc_sc,
                       *, tk_valid, tk_tile, tk_pad):
    _flash_body(dec_ref, enc_ref, ctx_ref, score_ref, m_sc, l_sc, acc_sc,
                tk_valid=tk_valid, tk_tile=tk_tile, tk_pad=tk_pad)


def _kernel_context_only(dec_ref, enc_ref, ctx_ref, m_sc, l_sc, acc_sc,
                         *, tk_valid, tk_tile, tk_pad):
    _flash_body(dec_ref, enc_ref, ctx_ref, None, m_sc, l_sc, acc_sc,
                tk_valid=tk_valid, tk_tile=tk_tile, tk_pad=tk_pad)


def dot_attention(decoder_state, encoder_output, *, tq_tile=256, tk_tile=512,
                  compute_dtype=jnp.bfloat16, return_score=True):
    """Pallas TPU implementation of Attention(mode='dot').forward.

    Args:
      decoder_state:  (B, Tq, H)
      encoder_output: (B, Tk, H)
      compute_dtype:  dtype of the MXU operands (None -> keep input dtype).
      return_score:   if False, skip the attn_score HBM writeback and return context only.
    Returns:
      (context (B, Tq, H), attn_score (B, Tq, Tk))  or just context if return_score=False.
    """
    B, Tq, H = decoder_state.shape
    Bk, Tk, Hk = encoder_output.shape
    assert B == Bk and H == Hk

    out_dtype = decoder_state.dtype
    cdtype = jnp.dtype(out_dtype) if compute_dtype is None else jnp.dtype(compute_dtype)

    # Lane-dense / tile-aligned padded shapes & tile sizes.
    H_pad = _round_up(H, 128)
    TQ = min(_round_up(tq_tile, 8), _round_up(Tq, 8))          # query tile (sublane mult)
    Tq_pad = _round_up(Tq, TQ)
    TK = min(_round_up(tk_tile, 128), _round_up(Tk, 128))      # key tile (lane mult)
    Tk_pad = _round_up(Tk, TK)
    num_q = Tq_pad // TQ
    num_k = Tk_pad // TK

    dec = decoder_state.astype(cdtype)
    enc = encoder_output.astype(cdtype)
    # Only pad when a dim is actually unaligned (padding is an extra HBM pass).
    if (Tq_pad, H_pad) != (Tq, H):
        dec = jnp.pad(dec, ((0, 0), (0, Tq_pad - Tq), (0, H_pad - H)))
    if (Tk_pad, H_pad) != (Tk, H):
        enc = jnp.pad(enc, ((0, 0), (0, Tk_pad - Tk), (0, H_pad - H)))
    # TODO(synk): ragged Tq/Tk edges could be handled fully in-kernel (masking + cdiv grid)
    #             to remove the remaining pad/slice HBM traffic.

    # Explicit VMEM budget: double-buffered blocks + scratch + in-kernel f32 temporaries.
    c_it = jnp.dtype(cdtype).itemsize
    o_it = jnp.dtype(out_dtype).itemsize
    step_bytes = (
        2 * TQ * H_pad * c_it                                # decoder block (x2 buffers)
        + 2 * TK * H_pad * c_it                              # encoder block (x2 buffers)
        + 2 * TQ * H_pad * o_it                              # context output block
        + (2 * TQ * TK * o_it if return_score else 0)        # score output block
        + TQ * H_pad * 4                                     # acc scratch (f32)
        + 2 * TQ * 128 * 4                                   # m/l scratch (lane-padded f32)
        + 3 * TQ * TK * 4                                    # f32 temporaries: s, p, mask
        + TQ * H_pad * 4                                     # second matmul result
    )
    vmem_cap = _vmem_capacity_bytes()                        # 128 MiB v5e/v6e, 64 MiB v7x
    vmem_limit = int(min(max(step_bytes + (4 << 20), 32 << 20), int(0.85 * vmem_cap)))

    kw = dict(tk_valid=Tk, tk_tile=TK, tk_pad=Tk_pad)
    ctx_struct = jax.ShapeDtypeStruct((B, Tq_pad, H_pad), out_dtype)
    ctx_spec = pl.BlockSpec((1, TQ, H_pad), lambda b, q, kt: (b, q, 0))
    if return_score:
        kernel = functools.partial(_kernel_with_score, **kw)
        out_shape = (ctx_struct, jax.ShapeDtypeStruct((B, Tq_pad, Tk_pad), out_dtype))
        out_specs = [ctx_spec,
                     pl.BlockSpec((1, TQ, TK), lambda b, q, kt: (b, q, kt))]
    else:
        kernel = functools.partial(_kernel_context_only, **kw)
        out_shape = ctx_struct
        out_specs = ctx_spec

    grid_spec = pltpu.PrefetchScalarGridSpec(
        num_scalar_prefetch=0,
        grid=(B, num_q, num_k),
        in_specs=[
            # decoder block: constant over kt -> stays resident across the reduction.
            pl.BlockSpec((1, TQ, H_pad), lambda b, q, kt: (b, q, 0)),
            # encoder block: streams along the kt reduction axis.
            pl.BlockSpec((1, TK, H_pad), lambda b, q, kt: (b, kt, 0)),
        ],
        out_specs=out_specs,
        scratch_shapes=[
            pltpu.VMEM((TQ, 1), jnp.float32),      # running max m_i
            pltpu.VMEM((TQ, 1), jnp.float32),      # running denominator l_i
            pltpu.VMEM((TQ, H_pad), jnp.float32),  # un-normalized context accumulator
        ],
    )

    outs = pl.pallas_call(
        kernel,
        out_shape=out_shape,
        grid_spec=grid_spec,
        compiler_params=pltpu.CompilerParams(
            dimension_semantics=("parallel", "parallel", "arbitrary"),
            vmem_limit_bytes=vmem_limit,
        ),
    )(dec, enc)

    if return_score:
        ctx_pad, score_pad = outs
    else:
        ctx_pad, score_pad = outs, None

    context = ctx_pad if (Tq_pad, H_pad) == (Tq, H) else ctx_pad[:, :Tq, :H]
    if not return_score:
        return context
    attn_score = score_pad if (Tq_pad, Tk_pad) == (Tq, Tk) else score_pad[:, :Tq, :Tk]
    return context, attn_score


def _reference(decoder_state, encoder_output):
    s = jnp.einsum("bqh,bkh->bqk", decoder_state, encoder_output)
    p = jax.nn.softmax(s, axis=2)
    ctx = jnp.einsum("bqk,bkh->bqh", p, encoder_output)
    return ctx, s


if __name__ == "__main__":
    B, Tq, Tk, H = 2, 8, 16, 32
    key = jax.random.PRNGKey(0)
    k1, k2 = jax.random.split(key)
    decoder_state = jax.random.normal(k1, (B, Tq, H), dtype=jnp.float32)
    encoder_output = jax.random.normal(k2, (B, Tk, H), dtype=jnp.float32)

    # 1) Exact path (f32 MXU operands) -> matches module semantics tightly.
    ctx_f32, score_f32 = dot_attention(decoder_state, encoder_output, compute_dtype=None)
    jax.block_until_ready((ctx_f32, score_f32))
    ctx_ref, score_ref = _reference(decoder_state, encoder_output)
    assert jnp.allclose(score_f32, score_ref, atol=1e-4, rtol=1e-4)
    # context uses the EUP approx reciprocal -> slightly looser tolerance.
    assert jnp.allclose(ctx_f32, ctx_ref, atol=5e-3, rtol=5e-3)

    # 2) Default fast path: bf16 MXU operands (f32 accumulation, f32 softmax chain).
    #    Compare against a reference fed the same bf16-quantized operands so the check
    #    isolates kernel correctness from the intentional bf16 cast.
    ctx_bf, score_bf = dot_attention(decoder_state, encoder_output)
    jax.block_until_ready((ctx_bf, score_bf))
    dq = decoder_state.astype(jnp.bfloat16).astype(jnp.float32)
    eq = encoder_output.astype(jnp.bfloat16).astype(jnp.float32)
    ctx_qref, score_qref = _reference(dq, eq)
    assert jnp.allclose(score_bf, score_qref, atol=2e-2, rtol=2e-2)
    assert jnp.allclose(ctx_bf, ctx_qref, atol=2e-2, rtol=2e-2)

    # 3) Context-only path (skips the attn_score HBM writeback).
    ctx_only = dot_attention(decoder_state, encoder_output, return_score=False)
    jax.block_until_ready(ctx_only)
    assert jnp.allclose(ctx_only, ctx_bf, atol=1e-3, rtol=1e-3)

    print("KERNEL_OK")
</pallas_src>

<mosaic_0001>
module attributes {stable_mosaic.version = 11 : i64} {
  func.func @_kernel_with_score(%arg0: i32, %arg1: i32, %arg2: i32, %arg3: memref<1x8x128xf32, #tpu.memory_space<vmem>>, %arg4: memref<1x128x128xf32, #tpu.memory_space<vmem>>, %arg5: memref<1x8x128xf32, #tpu.memory_space<vmem>>, %arg6: memref<1x8x128xf32, #tpu.memory_space<vmem>>, %arg7: memref<8x1xf32, #tpu.memory_space<vmem>>, %arg8: memref<8x1xf32, #tpu.memory_space<vmem>>, %arg9: memref<8x128xf32, #tpu.memory_space<vmem>>) attributes {dimension_semantics = [#tpu.dimension_semantics<parallel>, #tpu.dimension_semantics<parallel>, #tpu.dimension_semantics<arbitrary>], iteration_bounds = array<i64: 2, 1, 1>, scalar_prefetch = 0 : i64, scratch_operands = 3 : i64, tpu.core_type = #tpu.core_type<tc>, window_params = [{transform_indices = @transform_0, window_bounds = array<i64: 1, 8, 128>}, {transform_indices = @transform_1, window_bounds = array<i64: 1, 128, 128>}, {transform_indices = @transform_2, window_bounds = array<i64: 1, 8, 128>}, {transform_indices = @transform_3, window_bounds = array<i64: 1, 8, 128>}]} {
    %c0_i32 = arith.constant 0 : i32
    %0 = arith.cmpi eq, %arg2, %c0_i32 : i32
    %1 = arith.extui %0 : i1 to i32
    %c0_i32_0 = arith.constant 0 : i32
    %2 = arith.cmpi ne, %1, %c0_i32_0 : i32
    scf.if %2 {
      %cst_27 = arith.constant 0xFF800000 : f32
      %44 = vector.broadcast %cst_27 : f32 to vector<8x1xf32>
      %c0_28 = arith.constant 0 : index
      %c0_29 = arith.constant 0 : index
      %45 = vector.load %arg7[%c0_28, %c0_29] : memref<8x1xf32, #tpu.memory_space<vmem>>, vector<8x1xf32>
      tpu.vector_store %arg7[%c0_28, %c0_29], %44 {strides = array<i32>} : memref<8x1xf32, #tpu.memory_space<vmem>>, vector<8x1xf32>,
      %cst_30 = arith.constant 0.000000e+00 : f32
      %46 = vector.broadcast %cst_30 : f32 to vector<8x1xf32>
      %c0_31 = arith.constant 0 : index
      %c0_32 = arith.constant 0 : index
      %47 = vector.load %arg8[%c0_31, %c0_32] : memref<8x1xf32, #tpu.memory_space<vmem>>, vector<8x1xf32>
      tpu.vector_store %arg8[%c0_31, %c0_32], %46 {strides = array<i32>} : memref<8x1xf32, #tpu.memory_space<vmem>>, vector<8x1xf32>,
      %cst_33 = arith.constant 0.000000e+00 : f32
      %48 = vector.broadcast %cst_33 : f32 to vector<8x128xf32>
      %c0_34 = arith.constant 0 : index
      %c0_35 = arith.constant 0 : index
      %49 = vector.load %arg9[%c0_34, %c0_35] : memref<8x128xf32, #tpu.memory_space<vmem>>, vector<8x128xf32>
      tpu.vector_store %arg9[%c0_34, %c0_35], %48 {strides = array<i32>} : memref<8x128xf32, #tpu.memory_space<vmem>>, vector<8x128xf32>,
    } else {
    }
    %c0 = arith.constant 0 : index
    %c0_1 = arith.constant 0 : index
    %c0_2 = arith.constant 0 : index
    %3 = vector.load %arg3[%c0, %c0_1, %c0_2] : memref<1x8x128xf32, #tpu.memory_space<vmem>>, vector<1x8x128xf32>
    %4 = vector.shape_cast %3 : vector<1x8x128xf32> to vector<8x128xf32>
    %c0_3 = arith.constant 0 : index
    %c0_4 = arith.constant 0 : index
    %c0_5 = arith.constant 0 : index
    %5 = vector.load %arg4[%c0_3, %c0_4, %c0_5] : memref<1x128x128xf32, #tpu.memory_space<vmem>>, vector<1x128x128xf32>
    %6 = vector.shape_cast %5 : vector<1x128x128xf32> to vector<128x128xf32>
    %cst = arith.constant dense<0.000000e+00> : vector<8x128xf32>
    %7 = tpu.matmul %4, %6, %cst {dimension_numbers = #tpu.dot_dimension_numbers<[1], [1], [0], [0], [0, 0, 1, 0], [], []>} : vector<8x128xf32>, vector<128x128xf32>, vector<8x128xf32> -> vector<8x128xf32>
    %c0_6 = arith.constant 0 : index
    %c0_7 = arith.constant 0 : index
    %c0_8 = arith.constant 0 : index
    %8 = vector.load %arg6[%c0_6, %c0_7, %c0_8] : memref<1x8x128xf32, #tpu.memory_space<vmem>>, vector<1x8x128xf32>
    %9 = vector.shape_cast %8 : vector<1x8x128xf32> to vector<8x128xf32>
    %10 = vector.shape_cast %7 : vector<8x128xf32> to vector<1x8x128xf32>
    tpu.vector_store %arg6[%c0_6, %c0_7, %c0_8], %10 {strides = array<i32>} : memref<1x8x128xf32, #tpu.memory_space<vmem>>, vector<1x8x128xf32>,
    %c128_i32 = arith.constant 128 : i32
    %11 = arith.muli %arg2, %c128_i32 : i32
    %12 = tpu.iota {dimensions = array<i32: 1>} : vector<8x128xi32>
    %13 = vector.broadcast %11 : i32 to vector<8x128xi32>
    %14 = arith.addi %13, %12 : vector<8x128xi32>
    %c16_i32 = arith.constant 16 : i32
    %15 = vector.broadcast %c16_i32 : i32 to vector<8x128xi32>
    %16 = arith.cmpi slt, %14, %15 : vector<8x128xi32>
    %cst_9 = arith.constant -1.000000e+30 : f32
    %17 = vector.broadcast %cst_9 : f32 to vector<8x128xf32>
    %18 = arith.select %16, %7, %17 : vector<8x128xi1>, vector<8x128xf32>
    %c0_10 = arith.constant 0 : index
    %c0_11 = arith.constant 0 : index
    %19 = vector.load %arg7[%c0_10, %c0_11] : memref<8x1xf32, #tpu.memory_space<vmem>>, vector<8x1xf32>
    %cst_12 = arith.constant dense<0xFF800000> : vector<8xf32>
    %20 = vector.multi_reduction <maximumf>, %18, %cst_12 [1] : vector<8x128xf32> to vector<8xf32>
    %21 = vector.shape_cast %20 : vector<8xf32> to vector<8x1xf32>
    %22 = arith.maximumf %19, %21 : vector<8x1xf32>
    %23 = arith.subf %19, %22 : vector<8x1xf32>
    %24 = math.exp %23 : vector<8x1xf32>
    %25 = vector.broadcast %22 : vector<8x1xf32> to vector<8x128xf32>
    %26 = arith.subf %18, %25 : vector<8x128xf32>
    %27 = math.exp %26 : vector<8x128xf32>
    %c0_13 = arith.constant 0 : index
    %c0_14 = arith.constant 0 : index
    %28 = vector.load %arg8[%c0_13, %c0_14] : memref<8x1xf32, #tpu.memory_space<vmem>>, vector<8x1xf32>
    %29 = arith.mulf %24, %28 : vector<8x1xf32>
    %cst_15 = arith.constant dense<0.000000e+00> : vector<8xf32>
    %30 = vector.multi_reduction <add>, %27, %cst_15 [1] : vector<8x128xf32> to vector<8xf32>
    %31 = vector.shape_cast %30 : vector<8xf32> to vector<8x1xf32>
    %32 = arith.addf %29, %31 : vector<8x1xf32>
    %c0_16 = arith.constant 0 : index
    %c0_17 = arith.constant 0 : index
    %33 = vector.load %arg8[%c0_16, %c0_17] : memref<8x1xf32, #tpu.memory_space<vmem>>, vector<8x1xf32>
    tpu.vector_store %arg8[%c0_16, %c0_17], %32 {strides = array<i32>} : memref<8x1xf32, #tpu.memory_space<vmem>>, vector<8x1xf32>,
    %c0_18 = arith.constant 0 : index
    %c0_19 = arith.constant 0 : index
    %34 = vector.load %arg9[%c0_18, %c0_19] : memref<8x128xf32, #tpu.memory_space<vmem>>, vector<8x128xf32>
    %35 = vector.broadcast %24 : vector<8x1xf32> to vector<8x128xf32>
    %36 = arith.mulf %35, %34 : vector<8x128xf32>
    %cst_20 = arith.constant dense<0.000000e+00> : vector<8x128xf32>
    %37 = tpu.matmul %27, %6, %cst_20 {dimension_numbers = #tpu.dot_dimension_numbers<[1], [0], [0], [1], [0, 0, 1, 1], [], []>} : vector<8x128xf32>, vector<128x128xf32>, vector<8x128xf32> -> vector<8x128xf32>
    %38 = arith.addf %36, %37 : vector<8x128xf32>
    %c0_21 = arith.constant 0 : index
    %c0_22 = arith.constant 0 : index
    %39 = vector.load %arg9[%c0_21, %c0_22] : memref<8x128xf32, #tpu.memory_space<vmem>>, vector<8x128xf32>
    tpu.vector_store %arg9[%c0_21, %c0_22], %38 {strides = array<i32>} : memref<8x128xf32, #tpu.memory_space<vmem>>, vector<8x128xf32>,
    %c0_23 = arith.constant 0 : index
    %c0_24 = arith.constant 0 : index
    %40 = vector.load %arg7[%c0_23, %c0_24] : memref<8x1xf32, #tpu.memory_space<vmem>>, vector<8x1xf32>
    tpu.vector_store %arg7[%c0_23, %c0_24], %22 {strides = array<i32>} : memref<8x1xf32, #tpu.memory_space<vmem>>, vector<8x1xf32>,
    %c0_i32_25 = arith.constant 0 : i32
    %41 = arith.cmpi eq, %arg2, %c0_i32_25 : i32
    %42 = arith.extui %41 : i1 to i32
    %c0_i32_26 = arith.constant 0 : i32
    %43 = arith.cmpi ne, %42, %c0_i32_26 : i32
    scf.if %43 {
      %c0_27 = arith.constant 0 : index
      %c0_28 = arith.constant 0 : index
      %44 = vector.load %arg9[%c0_27, %c0_28] : memref<8x128xf32, #tpu.memory_space<vmem>>, vector<8x128xf32>
      %c0_29 = arith.constant 0 : index
      %c0_30 = arith.constant 0 : index
      %45 = vector.load %arg8[%c0_29, %c0_30] : memref<8x1xf32, #tpu.memory_space<vmem>>, vector<8x1xf32>
      %46 = tpu.reciprocal %45 {approx = true} : vector<8x1xf32> -> vector<8x1xf32>
      %47 = vector.broadcast %46 : vector<8x1xf32> to vector<8x128xf32>
      %48 = arith.mulf %44, %47 : vector<8x128xf32>
      %c0_31 = arith.constant 0 : index
      %c0_32 = arith.constant 0 : index
      %c0_33 = arith.constant 0 : index
      %49 = vector.load %arg5[%c0_31, %c0_32, %c0_33] : memref<1x8x128xf32, #tpu.memory_space<vmem>>, vector<1x8x128xf32>
      %50 = vector.shape_cast %49 : vector<1x8x128xf32> to vector<8x128xf32>
      %51 = vector.shape_cast %48 : vector<8x128xf32> to vector<1x8x128xf32>
      tpu.vector_store %arg5[%c0_31, %c0_32, %c0_33], %51 {strides = array<i32>} : memref<1x8x128xf32, #tpu.memory_space<vmem>>, vector<1x8x128xf32>,
    } else {
    }
    return
  }
  func.func @transform_0(%arg0: i32, %arg1: i32, %arg2: i32) -> (i32, i32, i32) {
    %c0_i32 = arith.constant 0 : i32
    %c0_i32_0 = arith.constant 0 : i32
    return %arg0, %arg1, %c0_i32 : i32, i32, i32
  }
  func.func @transform_1(%arg0: i32, %arg1: i32, %arg2: i32) -> (i32, i32, i32) {
    %c0_i32 = arith.constant 0 : i32
    %c0_i32_0 = arith.constant 0 : i32
    return %arg0, %arg2, %c0_i32 : i32, i32, i32
  }
  func.func @transform_2(%arg0: i32, %arg1: i32, %arg2: i32) -> (i32, i32, i32) {
    %c0_i32 = arith.constant 0 : i32
    %c0_i32_0 = arith.constant 0 : i32
    return %arg0, %arg1, %c0_i32 : i32, i32, i32
  }
  func.func @transform_3(%arg0: i32, %arg1: i32, %arg2: i32) -> (i32, i32, i32) {
    %c0_i32 = arith.constant 0 : i32
    return %arg0, %arg1, %arg2 : i32, i32, i32
  }
}

</mosaic_0001>

<bundles_post_ra>
// kernel: tpu_custom_call.1
= control target key start
LH: loop header
LB: loop body
LE: loop exit
PB: predicated region body
PF: predicated region fallthrough
CT: control target
= control target key end

     0   :  { %9 = vsyncpa [#allocation6], 0  ;;  %s1419_s0 = inlined_call_operand.hbm [shape: f32[2,8,128], index: 0, kind: input, shape index: {}]   ;;  %s1420_s1 = inlined_call_operand.hbm [shape: f32[2,128,128], index: 1, kind: input, shape index: {}]   ;;  %s1421_s2 = inlined_call_operand.hbm [shape: f32[2,8,128], index: 2, kind: output, shape index: {0}]   ;;  %s1422_s3 = inlined_call_operand.hbm [shape: f32[2,8,128], index: 3, kind: output, shape index: {1}]  }
   0x1   :  { %11 = vsyncpa [#allocation6 + $0x1], 0 }
   0x2   :  { %12 = vsyncpa [#allocation9], 0 }
   0x3   :  { %14 = vsyncpa [#allocation9 + $0x1], 0 }
   0x4   :  { %15 = vsyncpa [#allocation7], 0 }
   0x5   :  { %17 = vsyncpa [#allocation7 + $0x1], 0 }
   0x6   :  { %18 = vsyncpa [#allocation12], 0 }
   0x7   :  { %20 = vsyncpa [#allocation12 + $0x1], 0  ;;  %s1137_s12 = smov 0   ;;  %s1139_s13 = smov 0  }
   0x8   :  { %s1141_s14 = smov 0   ;;  %s1143_s15 = smov 0  }
   0x9   :  { %s1145_s16 = smov 0   ;;  %s1147_s17 = smov 0  }
   0xa LB: > { %s666_s18 = sadd.s32 4294967295, %s1104_s17   ;;  %s667_s19 = sadd.s32 4294967294, %s1104_s17   ;;  %s1104_s17 = sphi %s1147_s17, %s26_s17   ;;  %s1100_s16 = sphi %s1145_s16, %s1441_s16   ;;  %s1096_s15 = sphi %s1143_s15, %s1440_s15   ;;  %s1092_s14 = sphi %s1141_s14, %s1439_s14   ;;  %s1088_s13 = sphi %s1139_s13, %s1438_s13   ;;  %s1084_s12 = sphi %s1137_s12, %s1437_s12  }
   0xb   : > { %s45_s20 = sadd.s32 1, %s1100_s16  ;;  %s54_s21 = sadd.s32 1, %s1092_s14 }
   0xc   : > { %p47_p0 = scmp.ge.s32.totalorder %s45_s20, 2  ;;  %p61_p1 = scmp.ne.s32.totalorder %s1092_s14, %s1088_s13 }
   0xd   : > { %p62_p2 = scmp.eq.s32.totalorder %s1104_s17, 0  ;;  %p67_p3 = scmp.ne.s32.totalorder %s1088_s13, %s1084_s12 }
   0xe   : > { %s1443_s20 = smov (%p47_p0, %s45_s20), 0  ;;  %p68_p5 = scmp.eq.s32.totalorder %s666_s18, 0 }
   0xf   : > { %p1178_p4 = por %p62_p2, %p61_p1  ;;  %s49_s23 = ssub.s32 %s1100_s16, %s1443_s20 }
  0x10   : > { %p121_p6 = scmp.eq.s32.totalorder %s666_s18, 1  ;;  %p52_p7 = scmp.eq.s32.totalorder %s49_s23, 0 }
  0x11   : > { %p1184_p8 = por %p68_p5, %p67_p3  ;;  %p127_p10 = scmp.eq.s32.totalorder %s667_s19, 1 }
  0x12   : > { %p1188_p9 = por %p121_p6, %p61_p1  ;;  %p861_p13 = scmp.lt.s32.totalorder %s1104_s17, 2 }
  0x13   : > { %s1426_s24 = scalar_select %p1184_p8, 1, 0 }
  0x14   : > { %s1427_s25 = scalar_select %p1188_p9, 1, 0 }
  0x15   : > { %s1193_s26 = scalar_select %p52_p7, %s1092_s14, %s54_s21  }
  0x16   : > { %p1195_p11 = por %p127_p10, %p67_p3  ;;  %s1202_s28 = sand.u32 1, %s1092_s14  }
  0x17   : > { %s670_s29 = sshll.u32 %s1202_s28, 3  ;;  %s671_s30 = sshll.u32 %s1100_s16, 7 }
  0x18   : > { %s1428_s27 = scalar_select %p1195_p11, 1, 0 }
  0x19   : > { %s1209_s6 = scalar_lea.hbm %s1419_s0, %s671_s30  ;;  %s181_s7 = scalar_lea.vmem [#allocation5], %s670_s29 }
  0x1a   : > { %s189_s8 = sshll.u32 %s181_s7, 4  ;;  %p1215_p0 = pnand %p861_p13, %p1178_p4  ;;  %s1211_s8 = int_to_ptr.vmem [resolvable:$true] %s189_s8 }
  0x1b   : > { %s178_s10 = scalar_lea.sflag [#allocation6], %s1202_s28  ;;  %s926_s11 = scalar_lea.hbm %s1209_s6, 128 }
  0x1c   : > { %p927_p3 = scmp.ne.s32.totalorder %s1209_s6, %s926_s11  ;;  %p928_p5 = pneg %p1215_p0 }
  0x1d   : > { %s931_s21 = scalar_lea.hbm %s1419_s0, 256  ;;  %p932_p4 = scmp.lt.u32.totalorder %s1209_s6, %s1419_s0 }
  0x1e   : > { %p929_p6 = pnand %p928_p5, %p927_p3  ;;  %p933_p10 = scmp.lt.u32.totalorder %s931_s21, %s926_s11 }
  0x1f   : > { %p935_p12 = scmp.lt.u32.totalorder %s926_s11, %s1209_s6 }
  0x20   : > { %p930_p7 = pneg %p929_p6  ;;  %p934_p13 = por %p933_p10, %p932_p4 }
  0x22   : > { %p936_p1 = por %p935_p12, %p934_p13 }
  0x24   : > { %p937_p2 = pnand %p936_p1, %p930_p7 }
  0x26   : > { %940 = shalt.err (!%p937_p2)
}
  0x27   : > { %s941_s29 = scalar_lea.vmem %s1211_s8, 128  ;;  %s1106_s30 = smov [#allocation5]  }
  0x28   : > { %p942_p3 = scmp.ne.s32.totalorder %s1211_s8, %s941_s29  ;;  %s946_s4 = sshll.u32 %s1106_s30, 4  ;;  %s947_s4 = int_to_ptr.vmem [resolvable:$false] %s946_s4 }
  0x29   : > { %s948_s5 = scalar_lea.vmem %s947_s4, 256  ;;  %p949_p9 = scmp.lt.s32.totalorder %s1211_s8, %s947_s4 }
  0x2a   : > { %p944_p6 = pnand %p942_p3, %p928_p5  ;;  %p950_p4 = scmp.lt.s32.totalorder %s948_s5, %s941_s29 }
  0x2c   : > { %p945_p11 = pneg %p944_p6  ;;  %p951_p10 = por %p950_p4, %p949_p9 }
  0x2e   : > { %p952_p12 = pnand %p951_p10, %p945_p11 }
  0x30   : > { %955 = shalt.err (!%p952_p12)
}
  0x31   : > { %850 = dma.hbm_to_vmem [thread:$0]  (!%p1215_p0), %s1209_s6, 128, %s1211_s8, %s178_s10  }
  0x32   : > { %p1430_p1 = scmp.lt.s32.totalorder %s1104_s17, 3  ;;  %p1431_p2 = scmp.ge.s32.totalorder %s1104_s17, 1 }
  0x33   : > { %s672_s11 = sshll.u32 %s1202_s28, 7  ;;  %s686_s18 = sshll.u32 %s1100_s16, 11 }
  0x34   : > { %p1251_p7 = pnand %p1431_p2, %p1430_p1  ;;  %s1260_s22 = scalar_lea.hbm %s1420_s1, %s686_s18 }
  0x35   : > { %s200_s23 = scalar_lea.vmem [#allocation8], %s672_s11  ;;  %s197_s6 = scalar_lea.sflag [#allocation9], %s1202_s28 }
  0x36   : > { %s209_s29 = sshll.u32 %s200_s23, 4  ;;  %s956_s8 = scalar_lea.hbm %s1260_s22, 2048  ;;  %s1262_s29 = int_to_ptr.vmem [resolvable:$true] %s209_s29 }
  0x37   : > { %p957_p9 = scmp.ne.s32.totalorder %s1260_s22, %s956_s8  ;;  %s961_s4 = scalar_lea.hbm %s1420_s1, 4096 }
  0x38   : > { %p962_p3 = scmp.lt.u32.totalorder %s1260_s22, %s1420_s1  ;;  %p963_p6 = scmp.lt.u32.totalorder %s961_s4, %s956_s8 }
  0x39   : > { %p959_p11 = pnand %p957_p9, %p928_p5  ;;  %p965_p10 = scmp.lt.u32.totalorder %s956_s8, %s1260_s22 }
  0x3a   : > { %p964_p4 = por %p963_p6, %p962_p3 }
  0x3b   : > { %p960_p13 = pneg %p959_p11 }
  0x3c   : > { %p966_p12 = por %p965_p10, %p964_p4 }
  0x3e   : > { %p967_p1 = pnand %p966_p12, %p960_p13 }
  0x40   : > { %970 = shalt.err (!%p967_p1)
}
  0x41   : > { %s971_s11 = scalar_lea.vmem %s1262_s29, 2048  ;;  %s1107_s19 = smov [#allocation8]  }
  0x42   : > { %p972_p2 = scmp.ne.s32.totalorder %s1262_s29, %s971_s11  ;;  %s976_s21 = sshll.u32 %s1107_s19, 4  ;;  %s977_s21 = int_to_ptr.vmem [resolvable:$false] %s976_s21 }
  0x43   : > { %s978_s23 = scalar_lea.vmem %s977_s21, 4096  ;;  %p979_p8 = scmp.lt.s32.totalorder %s1262_s29, %s977_s21 }
  0x44   : > { %p974_p9 = pnand %p972_p2, %p928_p5  ;;  %p980_p3 = scmp.lt.s32.totalorder %s978_s23, %s971_s11 }
  0x46   : > { %p975_p11 = pneg %p974_p9  ;;  %p981_p6 = por %p980_p3, %p979_p8 }
  0x48   : > { %p982_p4 = pnand %p981_p6, %p975_p11 }
  0x4a   : > { %985 = shalt.err (!%p982_p4)
}
  0x4b   : > { %s1108_s8 = smov 128   ;;  %s1109_s10 = smov 8  }
  0x4c   : > { %853 = dma.hbm_to_vmem [thread:$0]  (!%p1215_p0), %s1260_s22, 2048, %s1262_s29, %s197_s6, %s1108_s8, %s1108_s8, %s1109_s10  }
  0x4d   : > { %221 = sbr.rel (%p1251_p7) target bundleno = 962 (0x3c2), region = 28  ;;  %s1293_s30 = sand.u32 (!%p1251_p7), 1, %s1088_s13  }
  0x4e   : > { %s1296_s4 = sshll.u32 (!%p1251_p7), %s1293_s30, 3  ;;  %s224_s5 = scalar_lea.sflag (!%p1251_p7), [#allocation6], %s1293_s30 }
  0x4f   : > { %s227_s18 = scalar_lea.vmem (!%p1251_p7), [#allocation5], %s1296_s4  ;;  %p1433_p8 = scmp.ne.s32.totalorder (!%p1251_p7), %s1426_s24, 0 }
  0x54   : > { %1067 = dma.done.wait (%p1433_p8), %s224_s5, 128  }
  0x55   : > { %1069 = vsyncadd (%p1433_p8), %s224_s5, 4294967168  ;;  %s677_s28 = sshll.u32 %s1293_s30, 7  ;;  %s233_s9 = scalar_lea.sflag [#allocation9], %s1293_s30 }
  0x56   : > { %s1306_s7 = scalar_lea.vmem [#allocation8], %s677_s28 }
  0x57   : > { %1071 = dma.done.wait (%p1433_p8), %s233_s9, 2048  }
  0x58   : > { %1073 = vsyncadd (%p1433_p8), %s233_s9, 4294965248  ;;  %vm274_vm0 = vcmask 7168   ;;  %v1110_v0 = vmov 0.0|0.0   ;;  %v1111_v1 = vmov -inf   ;;  %v1112_v2 = vmov 0.0   ;;  %v279_v3 = vld [vmem:[%s1306_s7] sm:$0xff] }
  0x59   : > { %791 = vmatprep.subr.bf16.mxu0 %v1110_v0  ;;  %275 = vst.msk [vmem:[#allocation2] sm:$0xff] %vm274_vm0, %v1111_v1  ;;  %276 = vst.msk [vmem:[#allocation3] sm:$0xff] %vm274_vm0, %v1112_v2  ;;  %815 = vmatprep.subr.bf16.mxu1 %v1110_v0  ;;  %vm1113_vm1 = vmmov 0   ;;  %v280_v4 = vld [vmem:[%s1306_s7 + $0x8] sm:$0xff]  ;;  %v281_v6 = vld [vmem:[%s1306_s7 + $0x10] sm:$0xff]  ;;  %v367_v28 = vlaneseq  ;;  %s268_s24 = scalar_lea.vmem [#allocation11], %s1296_s4 }
  0x5a   : > { %753 = vmatprep.mubr.msk.f32.mxu0 %vm1113_vm1, %v1112_v2  ;;  %788 = vmatprep.mubr.msk.f32.mxu1 %vm1113_vm1, %v1112_v2  ;;  %v792_v5 = vpack.c.bf16 %v280_v4, %v279_v3  ;;  %v282_v7 = vld [vmem:[%s1306_s7 + $0x18] sm:$0xff]  ;;  %v283_v9 = vld [vmem:[%s1306_s7 + $0x20] sm:$0xff]  ;;  %v284_v10 = vld [vmem:[%s1306_s7 + $0x28] sm:$0xff]  ;;  %v1114_v33 = vmov 0   ;;  %s523_s22 = sshll.u32 %s268_s24, 4  ;;  %s682_s29 = sshll.u32 %s1096_s15, 7  ;;  %s1340_s22 = int_to_ptr.vmem [resolvable:$true] %s523_s22 }
  0x5b   : > { %v795_v8 = vpack.c.bf16 %v282_v7, %v281_v6  ;;  %v798_v11 = vpack.c.bf16 %v284_v10, %v283_v9  ;;  %v285_v12 = vld [vmem:[%s1306_s7 + $0x30] sm:$0xff]  ;;  %v286_v13 = vld [vmem:[%s1306_s7 + $0x38] sm:$0xff]  ;;  %v287_v15 = vld [vmem:[%s1306_s7 + $0x40] sm:$0xff]  ;;  %v368_v29 = vand.u32 127, %v367_v28  ;;  %918 = vset.pattern.permute.xlu0 %v1114_v33  ;;  %919 = vset.pattern.permute.xlu1 %v1114_v33  ;;  %s521_s19 = scalar_lea.hbm %s1422_s3, %s682_s29  ;;  %s494_s21 = scalar_lea.sflag [#allocation12], %s1293_s30 }
  0x5c   : > { %793 = vmatpush3.bf16.xpose.msra.mxu0 %v792_v5  ;;  %817 = vmatpush3.bf16.msra.mxu1 %v792_v5  ;;  %v801_v14 = vpack.c.bf16 %v286_v13, %v285_v12  ;;  %v288_v16 = vld [vmem:[%s1306_s7 + $0x48] sm:$0xff]  ;;  %v289_v18 = vld [vmem:[%s1306_s7 + $0x50] sm:$0xff]  ;;  %v290_v19 = vld [vmem:[%s1306_s7 + $0x58] sm:$0xff]  ;;  %s986_s23 = scalar_lea.vmem %s1340_s22, 128  ;;  %p1434_p5 = scmp.ne.s32.totalorder %s1427_s25, 0 }
  0x5d   : > { %794 = vmatprep.subr.bf16.mxu0 %v1110_v0  ;;  %818 = vmatprep.subr.bf16.mxu1 %v1110_v0  ;;  %v804_v17 = vpack.c.bf16 %v288_v16, %v287_v15  ;;  %v807_v20 = vpack.c.bf16 %v290_v19, %v289_v18  ;;  %v291_v21 = vld [vmem:[%s1306_s7 + $0x60] sm:$0xff]  ;;  %v292_v22 = vld [vmem:[%s1306_s7 + $0x68] sm:$0xff]  ;;  %v293_v24 = vld [vmem:[%s1306_s7 + $0x70] sm:$0xff]  ;;  %vm371_vm2 = vcmp.lt.s32.totalorder %v368_v29, 16  ;;  %p987_p0 = scmp.ne.s32.totalorder %s1340_s22, %s986_s23  ;;  %s1115_s8 = smov [#allocation11]  }
  0x5e   : > { %v810_v23 = vpack.c.bf16 %v292_v22, %v291_v21  ;;  %v294_v25 = vld [vmem:[%s1306_s7 + $0x78] sm:$0xff]  ;;  %s990_s10 = sshll.u32 %s1115_s8, 4  ;;  %s991_s10 = int_to_ptr.vmem [resolvable:$false] %s990_s10 }
  0x5f   : > { %v813_v26 = vpack.c.bf16 %v294_v25, %v293_v24  ;;  %v278_v27 = vld [vmem:[%s227_s18] sm:$0xff]  ;;  %p988_p7 = pnand %p987_p0, %p1434_p5  ;;  %s992_s5 = scalar_lea.vmem %s991_s10, 256 }
  0x60   : > { %820 = vmatpush3.bf16.msra.mxu1 %v795_v8  ;;  %v373_v34 = vld [vmem:[#allocation2] sm:$0xff]  ;;  %v388_v44 = vld [vmem:[#allocation3] sm:$0xff]  ;;  %p993_p10 = scmp.lt.s32.totalorder %s1340_s22, %s991_s10  ;;  %p994_p12 = scmp.lt.s32.totalorder %s992_s5, %s986_s23 }
  0x61   : > { %821 = vmatprep.subr.bf16.mxu1 %v1110_v0  ;;  %p989_p13 = pneg %p988_p7 }
  0x62   : > { %p995_p1 = por %p994_p12, %p993_p10 }
  0x64   : > { %796 = vmatpush3.bf16.xpose.msra.mxu0 %v795_v8  ;;  %823 = vmatpush3.bf16.msra.mxu1 %v798_v11  ;;  %p996_p2 = pnand %p995_p1, %p989_p13 }
  0x65   : > { %797 = vmatprep.subr.bf16.mxu0 %v1110_v0  ;;  %824 = vmatprep.subr.bf16.mxu1 %v1110_v0 }
  0x68   : > { %826 = vmatpush3.bf16.msra.mxu1 %v801_v14 }
  0x69   : > { %827 = vmatprep.subr.bf16.mxu1 %v1110_v0 }
  0x6c   : > { %799 = vmatpush3.bf16.xpose.msra.mxu0 %v798_v11  ;;  %829 = vmatpush3.bf16.msra.mxu1 %v804_v17 }
  0x6d   : > { %800 = vmatprep.subr.bf16.mxu0 %v1110_v0  ;;  %830 = vmatprep.subr.bf16.mxu1 %v1110_v0 }
  0x70   : > { %832 = vmatpush3.bf16.msra.mxu1 %v807_v20 }
  0x71   : > { %833 = vmatprep.subr.bf16.mxu1 %v1110_v0 }
  0x74   : > { %802 = vmatpush3.bf16.xpose.msra.mxu0 %v801_v14  ;;  %835 = vmatpush3.bf16.msra.mxu1 %v810_v23 }
  0x75   : > { %803 = vmatprep.subr.bf16.mxu0 %v1110_v0  ;;  %836 = vmatprep.subr.bf16.mxu1 %v1110_v0 }
  0x78   : > { %838 = vmatpush3.bf16.msra.mxu1 %v813_v26 }
  0x7c   : > { %805 = vmatpush3.bf16.xpose.msra.mxu0 %v804_v17 }
  0x7d   : > { %806 = vmatprep.subr.bf16.mxu0 %v1110_v0 }
  0x84   : > { %808 = vmatpush3.bf16.xpose.msra.mxu0 %v807_v20 }
  0x85   : > { %809 = vmatprep.subr.bf16.mxu0 %v1110_v0 }
  0x8c   : > { %811 = vmatpush3.bf16.xpose.msra.mxu0 %v810_v23 }
  0x8d   : > { %812 = vmatprep.subr.bf16.mxu0 %v1110_v0 }
  0x94   : > { %814 = vmatpush3.bf16.xpose.msra.mxu0 %v813_v26 }
  0x9b   : > { %754 = vmatmul.mubr.f32.vlgmr.msra.gmra.mrb[0].mxu0 %v278_v27 }
 0x16e   : > { %v361_v30 = vpop.f32.mrb[0].mxu0 }
 0x16f   : > { %365 = vst [vmem:[%s268_s24] sm:$0xff] %v361_v30  ;;  %v755_v31 = vpop.f32.mrb[1].mxu0  ;;  %v372_v32 = vsel %vm371_vm2, %v361_v30, -1e+30 }
 0x170   : > { %374 = vmax.xlane.f32.xlu0 %v372_v32 }
 0x1fd   : > { %v375_v35 = vpop.xlane.xlu0 %374 }
 0x1fe   : > { %v376_v36 = vmax.f32 %v373_v34, %v375_v35 }
 0x200   : > { %v377_v37 = vsub.f32 %v373_v34, %v376_v36  ;;  %474 = vst.msk [vmem:[#allocation2] sm:$0xff] %vm274_vm0, %v376_v36  ;;  %382 = vperm.xlu0 %918, %v376_v36  }
 0x202   : > { %v378_v42 = vmul.f32 1.442695, %v377_v37 }
 0x27f   : > { %v383_v38 = vpop.permute.xlu0 %382 }
 0x280   : > { %v385_v39 = vsub.f32 %v372_v32, %v383_v38 }
 0x282   : > { %v386_v40 = vmul.f32 1.442695, %v385_v39 }
 0x284   : > { %920 = vpow2.f32 %v386_v40 }
 0x285   : > { %922 = vpow2.f32 %v378_v42 }
 0x28e   : > { %v921_v41 = vpop.eup %920 }
 0x28f   : > { %390 = vadd.xlane.f32.xlu1 %v921_v41  ;;  %789 = vmatmul.mubr.f32.vlgmr.msra.gmra.mrb[0].mxu1 %v921_v41  ;;  %v923_v43 = vpop.eup %922 }
 0x290   : > { %v389_v45 = vmul.f32 %v923_v43, %v388_v44 }
 0x2a0   : > { %398 = vperm.xlu1 %919, %v923_v43  }
 0x31c   : > { %v391_v46 = vpop.xlane.xlu1 %390 }
 0x31d   : > { %v392_v47 = vadd.f32 %v391_v46, %v389_v45 }
 0x31f   : > { %394 = vst.msk [vmem:[#allocation3] sm:$0xff] %vm274_vm0, %v392_v47 }
 0x326   : > { %v479_v48 = vld [vmem:[#allocation3] sm:$0xff] }
 0x327   : > { %924 = vrcp.f32 %v479_v48 }
 0x331   : > { %v925_v49 = vpop.eup %924 }
 0x332   : > { %483 = vperm.xlu1 %919, %v925_v49  }
 0x333   : > { %999 = shalt.err (!%p996_p2)
}
 0x334   : > { %s1000_s18 = scalar_lea.hbm %s521_s19, 128  ;;  %s1004_s7 = scalar_lea.hbm %s1422_s3, 256 }
 0x335   : > { %p1001_p9 = scmp.ne.s32.totalorder %s521_s19, %s1000_s18  ;;  %p1005_p6 = scmp.lt.u32.totalorder %s521_s19, %s1422_s3 }
 0x336   : > { %p1006_p4 = scmp.lt.u32.totalorder %s1004_s7, %s1000_s18  ;;  %p1008_p0 = scmp.lt.u32.totalorder %s1000_s18, %s521_s19 }
 0x337   : > { %p1002_p11 = pnand %p1001_p9, %p1434_p5 }
 0x338   : > { %p1007_p8 = por %p1006_p4, %p1005_p6 }
 0x339   : > { %p1003_p3 = pneg %p1002_p11 }
 0x33a   : > { %p1009_p7 = por %p1008_p0, %p1007_p8 }
 0x33c   : > { %p1010_p13 = pnand %p1009_p7, %p1003_p3 }
 0x33e   : > { %1013 = shalt.err (!%p1010_p13)
}
 0x33f   : > { %844 = dma.vmem_to_hbm [thread:$0]  (%p1434_p5), %s1340_s22, 128, %s521_s19, %s494_s21   ;;  %v399_v52 = vpop.permute.xlu1 %398 }
 0x340   : > { %v401_v53 = vmul.f32 0.0, %v399_v52  ;;  %s261_s11 = scalar_lea.vmem [#allocation10], %s1296_s4  ;;  %s1370_s5 = scalar_lea.hbm %s1421_s2, %s682_s29 }
 0x341   : > { %s508_s23 = sshll.u32 %s261_s11, 4  ;;  %s489_s22 = scalar_lea.sflag [#allocation7], %s1293_s30  ;;  %s1372_s23 = int_to_ptr.vmem [resolvable:$true] %s508_s23 }
 0x342   : > { %s1014_s19 = scalar_lea.vmem %s1372_s23, 128  ;;  %s1116_s4 = smov [#allocation10]  }
 0x343   : > { %p1015_p10 = scmp.ne.s32.totalorder %s1372_s23, %s1014_s19  ;;  %s1018_s21 = sshll.u32 %s1116_s4, 4  ;;  %s1019_s21 = int_to_ptr.vmem [resolvable:$false] %s1018_s21 }
 0x344   : > { %s1020_s15 = scalar_lea.vmem %s1019_s21, 256  ;;  %p1021_p2 = scmp.lt.s32.totalorder %s1372_s23, %s1019_s21 }
 0x345   : > { %p1016_p12 = pnand %p1015_p10, %p1434_p5  ;;  %p1022_p9 = scmp.lt.s32.totalorder %s1020_s15, %s1014_s19 }
 0x347   : > { %p1017_p1 = pneg %p1016_p12  ;;  %p1023_p11 = por %p1022_p9, %p1021_p2 }
 0x349   : > { %p1024_p3 = pnand %p1023_p11, %p1017_p1 }
 0x362   : > { %v468_v50 = vpop.f32.mrb[0].mxu1 }
 0x363   : > { %v790_v51 = vpop.f32.mrb[1].mxu1  ;;  %v472_v54 = vadd.f32 %v468_v50, %v401_v53 }
 0x3b1   : > { %v484_v55 = vpop.permute.xlu1 %483 }
 0x3b2   : > { %v486_v56 = vmul.f32 %v484_v55, %v472_v54 }
 0x3b4   : > { %487 = vst [vmem:[%s261_s11] sm:$0xff] %v486_v56 }
 0x3b5   : > { %1027 = shalt.err (!%p1024_p3)
}
 0x3b6   : > { %s1028_s30 = scalar_lea.hbm %s1370_s5, 128  ;;  %s1032_s28 = scalar_lea.hbm %s1421_s2, 256 }
 0x3b7   : > { %p1029_p6 = scmp.ne.s32.totalorder %s1370_s5, %s1028_s30  ;;  %p1033_p0 = scmp.lt.u32.totalorder %s1370_s5, %s1421_s2 }
 0x3b8   : > { %p1034_p7 = scmp.lt.u32.totalorder %s1032_s28, %s1028_s30  ;;  %p1036_p10 = scmp.lt.u32.totalorder %s1028_s30, %s1370_s5 }
 0x3b9   : > { %p1030_p4 = pnand %p1029_p6, %p1434_p5 }
 0x3ba   : > { %p1035_p13 = por %p1034_p7, %p1033_p0 }
 0x3bb   : > { %p1031_p8 = pneg %p1030_p4 }
 0x3bc   : > { %p1037_p12 = por %p1036_p10, %p1035_p13 }
 0x3be   : > { %p1038_p1 = pnand %p1037_p12, %p1031_p8 }
 0x3c0   : > { %1041 = shalt.err (!%p1038_p1)
}
 0x3c1   : > { %843 = dma.vmem_to_hbm [thread:$0]  (%p1434_p5), %s1372_s23, 128, %s1370_s5, %s489_s22  }
 0x3c2 PF: > { %s535_s24 = sand.u32 1, %s1084_s12   ;;  %p1435_p2 = scmp.ne.s32.totalorder %s1428_s27, 0 }
 0x3c3   : > { %p1436_p9 = scmp.ge.s32.totalorder %s1104_s17, 2  ;;  %s536_s6 = scalar_lea.sflag [#allocation7], %s535_s24 }
 0x3c5   : > { %p855_p11 = pnand %p1436_p9, %p1435_p2 }
 0x3c7   : > { %1075 = dma.done.wait (!%p855_p11), %s536_s6, 128  }
 0x3c8   : > { %1077 = vsyncadd (!%p855_p11), %s536_s6, 4294967168  ;;  %s545_s11 = scalar_lea.sflag [#allocation12], %s535_s24 }
 0x3c9   : > { %1079 = dma.done.wait (!%p855_p11), %s545_s11, 128  }
 0x3ca   : > { %1081 = vsyncadd (!%p855_p11), %s545_s11, 4294967168  ;;  %s26_s17 = sadd.s32 1, %s1104_s17   ;;  %s1437_s12 = smov %s1088_s13 }
 0x3cb   : > { %p23_p3 = scmp.ge.s32.totalorder %s26_s17, 4   ;;  %s1438_s13 = smov %s1092_s14 }
 0x3cc   : > { %s1439_s14 = smov %s1193_s26  ;;  %s1440_s15 = smov %s1100_s16 }
 0x3cd   : > { %s1441_s16 = smov %s1443_s20  ;;  %25 = sbr.rel (!%p23_p3) target bundleno = 10 (0xa), region = 111 }
 0x3d4   :  { %550 = vsyncpa [#allocation6], 1 }
 0x3d5   :  { %552 = vsyncpa [#allocation6 + $0x1], 1 }
 0x3d6   :  { %553 = vsyncpa [#allocation9], 1 }
 0x3d7   :  { %555 = vsyncpa [#allocation9 + $0x1], 1 }
 0x3d8   :  { %556 = vsyncpa [#allocation7], 1 }
 0x3d9   :  { %558 = vsyncpa [#allocation7 + $0x1], 1 }
 0x3da   :  { %559 = vsyncpa [#allocation12], 1 }
 0x3db   :  { %561 = vsyncpa [#allocation12 + $0x1], 1 }

</bundles_post_ra>
